<compile_context>
chip_gen: v6e
topology: v6e:2x2x1
jax: 0.10.0
libtpu: 0.0.40
codegen_flags: <defaults>
</compile_context>

<pallas_src>
import functools

import jax
import jax.numpy as jnp
from jax.experimental import pallas as pl
from jax.experimental.pallas import tpu as pltpu


# ------------------------------ small helpers --------------------------------
def _cdiv(a, b):
    return -(-a // b)


def _round_up(a, b):
    return _cdiv(a, b) * b


def _phys_bytes(rows, cols, dtype_bytes):
    """Physical VMEM bytes of a (rows, cols) tile incl. (sublane,128) padding."""
    sub = 16 if dtype_bytes == 2 else 8
    return _round_up(max(rows, 1), sub) * _round_up(max(cols, 1), 128) * dtype_bytes


def _vmem_capacity_bytes():
    try:
        return int(pltpu.get_tpu_info().vmem_capacity_bytes)
    except Exception:  # conservative fallback: v7x has the smallest VMEM (64 MiB)
        return 64 << 20


def _working_set_bytes(tm, cin, cout, wp, s, k, dh_span, dw_need):
    """Per-grid-step VMEM with physical tile padding and double buffering."""
    n_pad = _round_up(tm * wp, 128)
    tr = dh_span + _cdiv(dw_need + n_pad, wp)
    in_b = _phys_bytes(cin, tr * wp, 2)                 # bf16 input window
    w_b = k * k * _phys_bytes(cout, cin, 2)             # bf16 weights
    bias_b = _phys_bytes(cout, 1, 4)                    # f32 bias
    out_b = s * s * _phys_bytes(cout, n_pad, 4)         # f32 output block
    acc_b = s * s * _phys_bytes(cout, n_pad, 4)         # live f32 accumulators
    return 2 * (in_b + w_b + bias_b + out_b) + acc_b


def _pick_row_tile(mh, cin, cout, wp, s, k, dh_span, dw_need, budget_bytes):
    """Largest phase-row tile TM whose working set fits the budget.

    TM does NOT have to divide MH (ragged last tile is padded and cropped in
    the wrapper).
    """
    best = 1
    for tm in range(1, mh + 1):
        if _working_set_bytes(tm, cin, cout, wp, s, k, dh_span, dw_need) <= budget_bytes:
            best = tm
    # TODO(synk): if even TM == 1 exceeds the budget (extremely wide images),
    #             the kernel would additionally need width tiling.
    return best


# ------------------------------ Pallas kernel --------------------------------
def _dcbr_kernel(x_ref, w_ref, b_ref, o_ref, *, taps, s, n_pad):
    # x_ref: (1, 1, Cin, TR*Wp)        bf16  haloed, row-flattened input window
    # w_ref: (K, K, Cout, Cin)         bf16  BN-scale-folded ConvTranspose weights
    # b_ref: (Cout, 1)                 f32   conv bias + BN shift folded
    # o_ref: (1, 1, s*s, Cout, NPAD)   f32   per-phase, row-flattened output tile
    cout = o_ref.shape[3]
    bias = b_ref[...]                                   # (Cout, 1), hoisted once

    for rh in range(s):                                 # static sub-pixel phases
        for rw in range(s):
            acc = jnp.zeros((cout, n_pad), jnp.float32)
            for kh, kw, start in taps[rh][rw]:          # static tap list
                # One MXU matmul per tap covering ALL rows of the tile:
                #   (Cout, Cin) @ (Cin, TM*Wp(+pad))  -> f32 accumulate.
                acc = acc + jnp.dot(
                    w_ref[kh, kw],                               # (Cout, Cin) bf16
                    x_ref[0, 0, :, pl.ds(start, n_pad)],         # (Cin, NPAD) bf16
                    preferred_element_type=jnp.float32,
                )
            # Fused (conv bias + BatchNorm(eval) shift) + ReLU epilogue in f32.
            # Store is lane-dense: NPAD is a multiple of 128.
            o_ref[0, 0, rh * s + rw] = jnp.maximum(acc + bias, 0.0)


# --------------------------------- wrapper ------------------------------------
@functools.partial(jax.jit, static_argnames=("k_size", "stride", "padding", "eps"))
def deconv2d_batchnorm_relu(x_nchw, deconv_w, deconv_b, bn_gamma, bn_beta,
                            bn_mean, bn_var, *, k_size, stride, padding, eps=1e-5):
    """ConvTranspose2d(k_size, stride, padding, bias=True) + BatchNorm2d(eval) + ReLU.

    x_nchw:   (N, Cin, H, W)
    deconv_w: (Cin, Cout, KH, KW)  -- PyTorch ConvTranspose2d weight layout
    """
    N, Cin, H, W = x_nchw.shape
    Cout = deconv_w.shape[1]
    k, s, p = int(k_size), int(stride), int(padding)

    OH = (H - 1) * s - 2 * p + k
    OW = (W - 1) * s - 2 * p + k
    if OH <= 0 or OW <= 0:
        raise ValueError("non-positive output size for this configuration")

    # ---- static polyphase tap tables ----------------------------------------
    # Output (oh, ow) with sub-pixel offsets rh = oh % s, rw = ow % s receives
    # taps kh in {(rh+p)%s, (rh+p)%s + s, ...} at raw input row
    # ih = oh//s + dh(rh, kh) with dh = (rh+p)//s - (kh - (rh+p)%s)//s
    # (and likewise for the width).  Out-of-range ih/iw read zero padding.
    h_taps, w_taps = [], []
    for rh in range(s):
        qh, ch = (rh + p) % s, (rh + p) // s
        h_taps.append([(kh, ch - (kh - qh) // s) for kh in range(qh, k, s)])
    for rw in range(s):
        qw, cw = (rw + p) % s, (rw + p) // s
        w_taps.append([(kw, cw - (kw - qw) // s) for kw in range(qw, k, s)])

    all_dh = [d for tl in h_taps for _, d in tl] or [0]
    all_dw = [d for tl in w_taps for _, d in tl] or [0]
    dh_min, dh_max = min(all_dh), max(all_dh)
    dw_min, dw_max = min(all_dw), max(all_dw)
    pad_h_lo = max(0, -dh_min)
    pad_w_lo = max(0, -dw_min)
    dh_span = dh_max - dh_min
    dw_need = dw_max + pad_w_lo

    MH, MW = _cdiv(OH, s), _cdiv(OW, s)            # per-phase output grid size
    Wp = pad_w_lo + max(W, MW + dw_max)            # padded raw input width

    # ---- tile selection (corrected VMEM accounting, v7x-safe budget) ---------
    vmem_cap = _vmem_capacity_bytes()
    budget = min(24 << 20, vmem_cap // 3)
    TM = _pick_row_tile(MH, Cin, Cout, Wp, s, k, dh_span, dw_need, budget)
    R = _cdiv(MH, TM)                              # ragged last tile allowed
    n_valid = TM * Wp                              # valid flattened cols / tile
    n_pad = _round_up(n_valid, 128)                # lane-dense store width
    TR = dh_span + _cdiv(dw_need + n_pad, Wp)      # haloed rows per input window
    Hp = max(pad_h_lo + H, (R - 1) * TM + dh_min + pad_h_lo + TR)
    vmem_limit = int(min(vmem_cap // 2,
                         max(32 << 20,
                             2 * _working_set_bytes(TM, Cin, Cout, Wp, s, k,
                                                    dh_span, dw_need))))

    # ---- host-side layout prep (raw input only; ~<1.3x halo duplication) -----
    xpad = jnp.zeros((N, Cin, Hp, Wp), jnp.bfloat16)
    xpad = xpad.at[:, :, pad_h_lo:pad_h_lo + H, pad_w_lo:pad_w_lo + W].set(
        x_nchw.astype(jnp.bfloat16))
    win = [xpad[:, :, t * TM + dh_min + pad_h_lo:
                      t * TM + dh_min + pad_h_lo + TR, :] for t in range(R)]
    x_tiles = jnp.stack(win, axis=1).reshape(N, R, Cin, TR * Wp)

    # Fold BN scale into the weights, conv bias + BN shift into a single bias.
    scale = bn_gamma / jnp.sqrt(bn_var + eps)                       # (Cout,)
    wf = jnp.transpose(deconv_w, (2, 3, 1, 0))                      # (K,K,Cout,Cin)
    wf = (wf * scale[None, None, :, None]).astype(jnp.bfloat16)
    bias = (bn_beta + (deconv_b - bn_mean) * scale).astype(jnp.float32)
    bias = bias.reshape(Cout, 1)

    # Static per-(phase, tap) flattened slice offsets into the input window.
    taps = tuple(
        tuple(
            tuple((kh, kw, (dh - dh_min) * Wp + dw + pad_w_lo)
                  for kh, dh in h_taps[rh] for kw, dw in w_taps[rw])
            for rw in range(s))
        for rh in range(s))

    # ---- Pallas call: grid over (image, phase-row tile), fully parallel ------
    out_flat = pl.pallas_call(
        functools.partial(_dcbr_kernel, taps=taps, s=s, n_pad=n_pad),
        out_shape=jax.ShapeDtypeStruct((N, R, s * s, Cout, n_pad), jnp.float32),
        grid_spec=pltpu.PrefetchScalarGridSpec(
            num_scalar_prefetch=0,
            grid=(N, R),
            in_specs=[
                pl.BlockSpec((1, 1, Cin, TR * Wp), lambda n, t: (n, t, 0, 0)),
                pl.BlockSpec((k, k, Cout, Cin), lambda n, t: (0, 0, 0, 0)),
                pl.BlockSpec((Cout, 1), lambda n, t: (0, 0)),
            ],
            out_specs=pl.BlockSpec((1, 1, s * s, Cout, n_pad),
                                   lambda n, t: (n, t, 0, 0, 0)),
        ),
        compiler_params=pltpu.CompilerParams(
            dimension_semantics=("parallel", "parallel"),
            vmem_limit_bytes=vmem_limit,
        ),
    )(x_tiles, wf, bias)

    # ---- sub-pixel interleave (pixel shuffle) + crop to NCHW -----------------
    # TODO(synk): fold this shuffle into the kernel's stores once Mosaic
    #             supports the required lane-granularity interleave reliably.
    y = out_flat[..., :n_valid].reshape(N, R, s, s, Cout, TM, Wp)[..., :MW]
    y = jnp.transpose(y, (0, 4, 1, 5, 2, 6, 3))        # (N,Cout,R,TM,s,MW,s)
    y = y.reshape(N, Cout, R * TM * s, MW * s)
    return y[:, :, :OH, :OW]


# -------------------------------- reference -----------------------------------
def _reference(x, wt, b, gamma, beta, mean, var, k, s, p, eps=1e-5):
    """Direct ConvTranspose2d definition (scatter-accumulate) + BN(eval) + ReLU."""
    N, Cin, H, W = x.shape
    Cout = wt.shape[1]
    full_h = (H - 1) * s + k
    full_w = (W - 1) * s + k
    ref = jnp.zeros((N, Cout, full_h, full_w), jnp.float32)
    for kh in range(k):
        for kw in range(k):
            contrib = jnp.einsum("nihw,io->nohw", x, wt[:, :, kh, kw])
            ref = ref.at[:, :, kh:kh + (H - 1) * s + 1:s,
                         kw:kw + (W - 1) * s + 1:s].add(contrib)
    ref = ref[:, :, p:full_h - p, p:full_w - p] + b[None, :, None, None]
    ref = (ref - mean[None, :, None, None]) / jnp.sqrt(var[None, :, None, None] + eps)
    ref = ref * gamma[None, :, None, None] + beta[None, :, None, None]
    return jnp.maximum(ref, 0.0)


# ----------------------------------- demo --------------------------------------
if __name__ == "__main__":
    key = jax.random.PRNGKey(0)
    k_x, k_w, k_b, k_g, k_be, k_m, k_v = jax.random.split(key, 7)

    # Module config: deconv2DBatchNormRelu(in_channels=4, n_filters=8,
    #                                      k_size=3, stride=2, padding=1, bias=True)
    N, Cin, H, W = 2, 4, 16, 16
    Cout, K, S, P = 8, 3, 2, 1

    x = jax.random.normal(k_x, (N, Cin, H, W), dtype=jnp.float32)
    deconv_w = 0.1 * jax.random.normal(k_w, (Cin, Cout, K, K), dtype=jnp.float32)
    deconv_b = 0.1 * jax.random.normal(k_b, (Cout,), dtype=jnp.float32)
    bn_gamma = 1.0 + 0.05 * jax.random.normal(k_g, (Cout,), dtype=jnp.float32)
    bn_beta = 0.05 * jax.random.normal(k_be, (Cout,), dtype=jnp.float32)
    bn_mean = 0.05 * jax.random.normal(k_m, (Cout,), dtype=jnp.float32)
    bn_var = jnp.abs(1.0 + 0.05 * jax.random.normal(k_v, (Cout,), dtype=jnp.float32))

    out = deconv2d_batchnorm_relu(
        x, deconv_w, deconv_b, bn_gamma, bn_beta, bn_mean, bn_var,
        k_size=K, stride=S, padding=P)
    jax.block_until_ready(out)

    OH = (H - 1) * S - 2 * P + K
    OW = (W - 1) * S - 2 * P + K
    ref = _reference(x, deconv_w, deconv_b, bn_gamma, bn_beta, bn_mean, bn_var,
                     K, S, P)

    assert out.shape == (N, Cout, OH, OW), out.shape
    # bf16 MXU operands => loosened tolerance vs the pure-f32 reference.
    max_err = float(jnp.max(jnp.abs(out - ref)))
    assert max_err < 3e-2, max_err
    print("KERNEL_OK")
</pallas_src>

<mosaic_0001>
module attributes {stable_mosaic.version = 11 : i64} {
  func.func @_dcbr_kernel(%arg0: i32, %arg1: i32, %arg2: memref<1x1x4x408xbf16, #tpu.memory_space<vmem>>, %arg3: memref<3x3x8x4xbf16, #tpu.memory_space<vmem>>, %arg4: memref<8x1xf32, #tpu.memory_space<vmem>>, %arg5: memref<1x1x4x8x384xf32, #tpu.memory_space<vmem>>) attributes {dimension_semantics = [#tpu.dimension_semantics<parallel>, #tpu.dimension_semantics<parallel>], iteration_bounds = array<i64: 2, 1>, scalar_prefetch = 0 : i64, scratch_operands = 0 : i64, tpu.core_type = #tpu.core_type<tc>, window_params = [{transform_indices = @transform_0, window_bounds = array<i64: 1, 1, 4, 408>}, {pipeline_mode = #tpu.pipeline_mode<synchronous>, transform_indices = @transform_1, window_bounds = array<i64: 3, 3, 8, 4>}, {pipeline_mode = #tpu.pipeline_mode<synchronous>, transform_indices = @transform_2, window_bounds = array<i64: 8, 1>}, {transform_indices = @transform_3, window_bounds = array<i64: 1, 1, 4, 8, 384>}]} {
    %c0 = arith.constant 0 : index
    %c0_0 = arith.constant 0 : index
    %0 = vector.load %arg4[%c0, %c0_0] : memref<8x1xf32, #tpu.memory_space<vmem>>, vector<8x1xf32>
    %cst = arith.constant 0.000000e+00 : f32
    %1 = vector.broadcast %cst : f32 to vector<8x384xf32>
    %c1 = arith.constant 1 : index
    %c1_1 = arith.constant 1 : index
    %c0_2 = arith.constant 0 : index
    %c0_3 = arith.constant 0 : index
    %2 = vector.load %arg3[%c1, %c1_1, %c0_2, %c0_3] : memref<3x3x8x4xbf16, #tpu.memory_space<vmem>>, vector<1x1x8x4xbf16>
    %3 = vector.shape_cast %2 : vector<1x1x8x4xbf16> to vector<8x4xbf16>
    %c0_4 = arith.constant 0 : index
    %c0_5 = arith.constant 0 : index
    %c0_6 = arith.constant 0 : index
    %c0_7 = arith.constant 0 : index
    %4 = vector.load %arg2[%c0_4, %c0_5, %c0_6, %c0_7] : memref<1x1x4x408xbf16, #tpu.memory_space<vmem>>, vector<1x1x4x384xbf16>
    %5 = vector.shape_cast %4 : vector<1x1x4x384xbf16> to vector<4x384xbf16>
    %cst_8 = arith.constant dense<0.000000e+00> : vector<8x384xf32>
    %6 = tpu.matmul %3, %5, %cst_8 {dimension_numbers = #tpu.dot_dimension_numbers<[1], [0], [0], [1], [0, 0, 1, 1], [], []>} : vector<8x4xbf16>, vector<4x384xbf16>, vector<8x384xf32> -> vector<8x384xf32>
    %7 = arith.addf %1, %6 : vector<8x384xf32>
    %8 = vector.broadcast %0 : vector<8x1xf32> to vector<8x384xf32>
    %9 = arith.addf %7, %8 : vector<8x384xf32>
    %cst_9 = arith.constant 0.000000e+00 : f32
    %10 = vector.broadcast %cst_9 : f32 to vector<8x384xf32>
    %11 = arith.maximumf %9, %10 : vector<8x384xf32>
    %c0_10 = arith.constant 0 : index
    %c0_11 = arith.constant 0 : index
    %c0_12 = arith.constant 0 : index
    %c0_13 = arith.constant 0 : index
    %c0_14 = arith.constant 0 : index
    %12 = vector.load %arg5[%c0_10, %c0_11, %c0_12, %c0_13, %c0_14] : memref<1x1x4x8x384xf32, #tpu.memory_space<vmem>>, vector<1x1x1x8x384xf32>
    %13 = vector.shape_cast %12 : vector<1x1x1x8x384xf32> to vector<8x384xf32>
    %14 = vector.shape_cast %11 : vector<8x384xf32> to vector<1x1x1x8x384xf32>
    tpu.vector_store %arg5[%c0_10, %c0_11, %c0_12, %c0_13, %c0_14], %14 {strides = array<i32>} : memref<1x1x4x8x384xf32, #tpu.memory_space<vmem>>, vector<1x1x1x8x384xf32>,
    %cst_15 = arith.constant 0.000000e+00 : f32
    %15 = vector.broadcast %cst_15 : f32 to vector<8x384xf32>
    %c1_16 = arith.constant 1 : index
    %c0_17 = arith.constant 0 : index
    %c0_18 = arith.constant 0 : index
    %c0_19 = arith.constant 0 : index
    %16 = vector.load %arg3[%c1_16, %c0_17, %c0_18, %c0_19] : memref<3x3x8x4xbf16, #tpu.memory_space<vmem>>, vector<1x1x8x4xbf16>
    %17 = vector.shape_cast %16 : vector<1x1x8x4xbf16> to vector<8x4xbf16>
    %c0_20 = arith.constant 0 : index
    %c0_21 = arith.constant 0 : index
    %c0_22 = arith.constant 0 : index
    %c1_23 = arith.constant 1 : index
    %18 = vector.load %arg2[%c0_20, %c0_21, %c0_22, %c1_23] : memref<1x1x4x408xbf16, #tpu.memory_space<vmem>>, vector<1x1x4x384xbf16>
    %19 = vector.shape_cast %18 : vector<1x1x4x384xbf16> to vector<4x384xbf16>
    %cst_24 = arith.constant dense<0.000000e+00> : vector<8x384xf32>
    %20 = tpu.matmul %17, %19, %cst_24 {dimension_numbers = #tpu.dot_dimension_numbers<[1], [0], [0], [1], [0, 0, 1, 1], [], []>} : vector<8x4xbf16>, vector<4x384xbf16>, vector<8x384xf32> -> vector<8x384xf32>
    %21 = arith.addf %15, %20 : vector<8x384xf32>
    %c1_25 = arith.constant 1 : index
    %c2 = arith.constant 2 : index
    %c0_26 = arith.constant 0 : index
    %c0_27 = arith.constant 0 : index
    %22 = vector.load %arg3[%c1_25, %c2, %c0_26, %c0_27] : memref<3x3x8x4xbf16, #tpu.memory_space<vmem>>, vector<1x1x8x4xbf16>
    %23 = vector.shape_cast %22 : vector<1x1x8x4xbf16> to vector<8x4xbf16>
    %c0_28 = arith.constant 0 : index
    %c0_29 = arith.constant 0 : index
    %c0_30 = arith.constant 0 : index
    %c0_31 = arith.constant 0 : index
    %24 = vector.load %arg2[%c0_28, %c0_29, %c0_30, %c0_31] : memref<1x1x4x408xbf16, #tpu.memory_space<vmem>>, vector<1x1x4x384xbf16>
    %25 = vector.shape_cast %24 : vector<1x1x4x384xbf16> to vector<4x384xbf16>
    %cst_32 = arith.constant dense<0.000000e+00> : vector<8x384xf32>
    %26 = tpu.matmul %23, %25, %cst_32 {dimension_numbers = #tpu.dot_dimension_numbers<[1], [0], [0], [1], [0, 0, 1, 1], [], []>} : vector<8x4xbf16>, vector<4x384xbf16>, vector<8x384xf32> -> vector<8x384xf32>
    %27 = arith.addf %21, %26 : vector<8x384xf32>
    %28 = vector.broadcast %0 : vector<8x1xf32> to vector<8x384xf32>
    %29 = arith.addf %27, %28 : vector<8x384xf32>
    %cst_33 = arith.constant 0.000000e+00 : f32
    %30 = vector.broadcast %cst_33 : f32 to vector<8x384xf32>
    %31 = arith.maximumf %29, %30 : vector<8x384xf32>
    %c0_34 = arith.constant 0 : index
    %c0_35 = arith.constant 0 : index
    %c1_36 = arith.constant 1 : index
    %c0_37 = arith.constant 0 : index
    %c0_38 = arith.constant 0 : index
    %32 = vector.load %arg5[%c0_34, %c0_35, %c1_36, %c0_37, %c0_38] : memref<1x1x4x8x384xf32, #tpu.memory_space<vmem>>, vector<1x1x1x8x384xf32>
    %33 = vector.shape_cast %32 : vector<1x1x1x8x384xf32> to vector<8x384xf32>
    %34 = vector.shape_cast %31 : vector<8x384xf32> to vector<1x1x1x8x384xf32>
    tpu.vector_store %arg5[%c0_34, %c0_35, %c1_36, %c0_37, %c0_38], %34 {strides = array<i32>} : memref<1x1x4x8x384xf32, #tpu.memory_space<vmem>>, vector<1x1x1x8x384xf32>,
    %cst_39 = arith.constant 0.000000e+00 : f32
    %35 = vector.broadcast %cst_39 : f32 to vector<8x384xf32>
    %c0_40 = arith.constant 0 : index
    %c1_41 = arith.constant 1 : index
    %c0_42 = arith.constant 0 : index
    %c0_43 = arith.constant 0 : index
    %36 = vector.load %arg3[%c0_40, %c1_41, %c0_42, %c0_43] : memref<3x3x8x4xbf16, #tpu.memory_space<vmem>>, vector<1x1x8x4xbf16>
    %37 = vector.shape_cast %36 : vector<1x1x8x4xbf16> to vector<8x4xbf16>
    %c0_44 = arith.constant 0 : index
    %c0_45 = arith.constant 0 : index
    %c0_46 = arith.constant 0 : index
    %c17 = arith.constant 17 : index
    %38 = vector.load %arg2[%c0_44, %c0_45, %c0_46, %c17] : memref<1x1x4x408xbf16, #tpu.memory_space<vmem>>, vector<1x1x4x384xbf16>
    %39 = vector.shape_cast %38 : vector<1x1x4x384xbf16> to vector<4x384xbf16>
    %cst_47 = arith.constant dense<0.000000e+00> : vector<8x384xf32>
    %40 = tpu.matmul %37, %39, %cst_47 {dimension_numbers = #tpu.dot_dimension_numbers<[1], [0], [0], [1], [0, 0, 1, 1], [], []>} : vector<8x4xbf16>, vector<4x384xbf16>, vector<8x384xf32> -> vector<8x384xf32>
    %41 = arith.addf %35, %40 : vector<8x384xf32>
    %c2_48 = arith.constant 2 : index
    %c1_49 = arith.constant 1 : index
    %c0_50 = arith.constant 0 : index
    %c0_51 = arith.constant 0 : index
    %42 = vector.load %arg3[%c2_48, %c1_49, %c0_50, %c0_51] : memref<3x3x8x4xbf16, #tpu.memory_space<vmem>>, vector<1x1x8x4xbf16>
    %43 = vector.shape_cast %42 : vector<1x1x8x4xbf16> to vector<8x4xbf16>
    %c0_52 = arith.constant 0 : index
    %c0_53 = arith.constant 0 : index
    %c0_54 = arith.constant 0 : index
    %c0_55 = arith.constant 0 : index
    %44 = vector.load %arg2[%c0_52, %c0_53, %c0_54, %c0_55] : memref<1x1x4x408xbf16, #tpu.memory_space<vmem>>, vector<1x1x4x384xbf16>
    %45 = vector.shape_cast %44 : vector<1x1x4x384xbf16> to vector<4x384xbf16>
    %cst_56 = arith.constant dense<0.000000e+00> : vector<8x384xf32>
    %46 = tpu.matmul %43, %45, %cst_56 {dimension_numbers = #tpu.dot_dimension_numbers<[1], [0], [0], [1], [0, 0, 1, 1], [], []>} : vector<8x4xbf16>, vector<4x384xbf16>, vector<8x384xf32> -> vector<8x384xf32>
    %47 = arith.addf %41, %46 : vector<8x384xf32>
    %48 = vector.broadcast %0 : vector<8x1xf32> to vector<8x384xf32>
    %49 = arith.addf %47, %48 : vector<8x384xf32>
    %cst_57 = arith.constant 0.000000e+00 : f32
    %50 = vector.broadcast %cst_57 : f32 to vector<8x384xf32>
    %51 = arith.maximumf %49, %50 : vector<8x384xf32>
    %c0_58 = arith.constant 0 : index
    %c0_59 = arith.constant 0 : index
    %c2_60 = arith.constant 2 : index
    %c0_61 = arith.constant 0 : index
    %c0_62 = arith.constant 0 : index
    %52 = vector.load %arg5[%c0_58, %c0_59, %c2_60, %c0_61, %c0_62] : memref<1x1x4x8x384xf32, #tpu.memory_space<vmem>>, vector<1x1x1x8x384xf32>
    %53 = vector.shape_cast %52 : vector<1x1x1x8x384xf32> to vector<8x384xf32>
    %54 = vector.shape_cast %51 : vector<8x384xf32> to vector<1x1x1x8x384xf32>
    tpu.vector_store %arg5[%c0_58, %c0_59, %c2_60, %c0_61, %c0_62], %54 {strides = array<i32>} : memref<1x1x4x8x384xf32, #tpu.memory_space<vmem>>, vector<1x1x1x8x384xf32>,
    %cst_63 = arith.constant 0.000000e+00 : f32
    %55 = vector.broadcast %cst_63 : f32 to vector<8x384xf32>
    %c0_64 = arith.constant 0 : index
    %c0_65 = arith.constant 0 : index
    %c0_66 = arith.constant 0 : index
    %c0_67 = arith.constant 0 : index
    %56 = vector.load %arg3[%c0_64, %c0_65, %c0_66, %c0_67] : memref<3x3x8x4xbf16, #tpu.memory_space<vmem>>, vector<1x1x8x4xbf16>
    %57 = vector.shape_cast %56 : vector<1x1x8x4xbf16> to vector<8x4xbf16>
    %c0_68 = arith.constant 0 : index
    %c0_69 = arith.constant 0 : index
    %c0_70 = arith.constant 0 : index
    %c18 = arith.constant 18 : index
    %58 = vector.load %arg2[%c0_68, %c0_69, %c0_70, %c18] : memref<1x1x4x408xbf16, #tpu.memory_space<vmem>>, vector<1x1x4x384xbf16>
    %59 = vector.shape_cast %58 : vector<1x1x4x384xbf16> to vector<4x384xbf16>
    %cst_71 = arith.constant dense<0.000000e+00> : vector<8x384xf32>
    %60 = tpu.matmul %57, %59, %cst_71 {dimension_numbers = #tpu.dot_dimension_numbers<[1], [0], [0], [1], [0, 0, 1, 1], [], []>} : vector<8x4xbf16>, vector<4x384xbf16>, vector<8x384xf32> -> vector<8x384xf32>
    %61 = arith.addf %55, %60 : vector<8x384xf32>
    %c0_72 = arith.constant 0 : index
    %c2_73 = arith.constant 2 : index
    %c0_74 = arith.constant 0 : index
    %c0_75 = arith.constant 0 : index
    %62 = vector.load %arg3[%c0_72, %c2_73, %c0_74, %c0_75] : memref<3x3x8x4xbf16, #tpu.memory_space<vmem>>, vector<1x1x8x4xbf16>
    %63 = vector.shape_cast %62 : vector<1x1x8x4xbf16> to vector<8x4xbf16>
    %c0_76 = arith.constant 0 : index
    %c0_77 = arith.constant 0 : index
    %c0_78 = arith.constant 0 : index
    %c17_79 = arith.constant 17 : index
    %64 = vector.load %arg2[%c0_76, %c0_77, %c0_78, %c17_79] : memref<1x1x4x408xbf16, #tpu.memory_space<vmem>>, vector<1x1x4x384xbf16>
    %65 = vector.shape_cast %64 : vector<1x1x4x384xbf16> to vector<4x384xbf16>
    %cst_80 = arith.constant dense<0.000000e+00> : vector<8x384xf32>
    %66 = tpu.matmul %63, %65, %cst_80 {dimension_numbers = #tpu.dot_dimension_numbers<[1], [0], [0], [1], [0, 0, 1, 1], [], []>} : vector<8x4xbf16>, vector<4x384xbf16>, vector<8x384xf32> -> vector<8x384xf32>
    %67 = arith.addf %61, %66 : vector<8x384xf32>
    %c2_81 = arith.constant 2 : index
    %c0_82 = arith.constant 0 : index
    %c0_83 = arith.constant 0 : index
    %c0_84 = arith.constant 0 : index
    %68 = vector.load %arg3[%c2_81, %c0_82, %c0_83, %c0_84] : memref<3x3x8x4xbf16, #tpu.memory_space<vmem>>, vector<1x1x8x4xbf16>
    %69 = vector.shape_cast %68 : vector<1x1x8x4xbf16> to vector<8x4xbf16>
    %c0_85 = arith.constant 0 : index
    %c0_86 = arith.constant 0 : index
    %c0_87 = arith.constant 0 : index
    %c1_88 = arith.constant 1 : index
    %70 = vector.load %arg2[%c0_85, %c0_86, %c0_87, %c1_88] : memref<1x1x4x408xbf16, #tpu.memory_space<vmem>>, vector<1x1x4x384xbf16>
    %71 = vector.shape_cast %70 : vector<1x1x4x384xbf16> to vector<4x384xbf16>
    %cst_89 = arith.constant dense<0.000000e+00> : vector<8x384xf32>
    %72 = tpu.matmul %69, %71, %cst_89 {dimension_numbers = #tpu.dot_dimension_numbers<[1], [0], [0], [1], [0, 0, 1, 1], [], []>} : vector<8x4xbf16>, vector<4x384xbf16>, vector<8x384xf32> -> vector<8x384xf32>
    %73 = arith.addf %67, %72 : vector<8x384xf32>
    %c2_90 = arith.constant 2 : index
    %c2_91 = arith.constant 2 : index
    %c0_92 = arith.constant 0 : index
    %c0_93 = arith.constant 0 : index
    %74 = vector.load %arg3[%c2_90, %c2_91, %c0_92, %c0_93] : memref<3x3x8x4xbf16, #tpu.memory_space<vmem>>, vector<1x1x8x4xbf16>
    %75 = vector.shape_cast %74 : vector<1x1x8x4xbf16> to vector<8x4xbf16>
    %c0_94 = arith.constant 0 : index
    %c0_95 = arith.constant 0 : index
    %c0_96 = arith.constant 0 : index
    %c0_97 = arith.constant 0 : index
    %76 = vector.load %arg2[%c0_94, %c0_95, %c0_96, %c0_97] : memref<1x1x4x408xbf16, #tpu.memory_space<vmem>>, vector<1x1x4x384xbf16>
    %77 = vector.shape_cast %76 : vector<1x1x4x384xbf16> to vector<4x384xbf16>
    %cst_98 = arith.constant dense<0.000000e+00> : vector<8x384xf32>
    %78 = tpu.matmul %75, %77, %cst_98 {dimension_numbers = #tpu.dot_dimension_numbers<[1], [0], [0], [1], [0, 0, 1, 1], [], []>} : vector<8x4xbf16>, vector<4x384xbf16>, vector<8x384xf32> -> vector<8x384xf32>
    %79 = arith.addf %73, %78 : vector<8x384xf32>
    %80 = vector.broadcast %0 : vector<8x1xf32> to vector<8x384xf32>
    %81 = arith.addf %79, %80 : vector<8x384xf32>
    %cst_99 = arith.constant 0.000000e+00 : f32
    %82 = vector.broadcast %cst_99 : f32 to vector<8x384xf32>
    %83 = arith.maximumf %81, %82 : vector<8x384xf32>
    %c0_100 = arith.constant 0 : index
    %c0_101 = arith.constant 0 : index
    %c3 = arith.constant 3 : index
    %c0_102 = arith.constant 0 : index
    %c0_103 = arith.constant 0 : index
    %84 = vector.load %arg5[%c0_100, %c0_101, %c3, %c0_102, %c0_103] : memref<1x1x4x8x384xf32, #tpu.memory_space<vmem>>, vector<1x1x1x8x384xf32>
    %85 = vector.shape_cast %84 : vector<1x1x1x8x384xf32> to vector<8x384xf32>
    %86 = vector.shape_cast %83 : vector<8x384xf32> to vector<1x1x1x8x384xf32>
    tpu.vector_store %arg5[%c0_100, %c0_101, %c3, %c0_102, %c0_103], %86 {strides = array<i32>} : memref<1x1x4x8x384xf32, #tpu.memory_space<vmem>>, vector<1x1x1x8x384xf32>,
    return
  }
  func.func @transform_0(%arg0: i32, %arg1: i32) -> (i32, i32, i32, i32) {
    %c0_i32 = arith.constant 0 : i32
    %c0_i32_0 = arith.constant 0 : i32
    %c0_i32_1 = arith.constant 0 : i32
    return %arg0, %arg1, %c0_i32, %c0_i32_0 : i32, i32, i32, i32
  }
  func.func @transform_1(%arg0: i32, %arg1: i32) -> (i32, i32, i32, i32) {
    %c0_i32 = arith.constant 0 : i32
    %c0_i32_0 = arith.constant 0 : i32
    %c0_i32_1 = arith.constant 0 : i32
    %c0_i32_2 = arith.constant 0 : i32
    %c0_i32_3 = arith.constant 0 : i32
    return %c0_i32, %c0_i32_0, %c0_i32_1, %c0_i32_2 : i32, i32, i32, i32
  }
  func.func @transform_2(%arg0: i32, %arg1: i32) -> (i32, i32) {
    %c0_i32 = arith.constant 0 : i32
    %c0_i32_0 = arith.constant 0 : i32
    %c0_i32_1 = arith.constant 0 : i32
    return %c0_i32, %c0_i32_0 : i32, i32
  }
  func.func @transform_3(%arg0: i32, %arg1: i32) -> (i32, i32, i32, i32, i32) {
    %c0_i32 = arith.constant 0 : i32
    %c0_i32_0 = arith.constant 0 : i32
    %c0_i32_1 = arith.constant 0 : i32
    %c0_i32_2 = arith.constant 0 : i32
    return %arg0, %arg1, %c0_i32, %c0_i32_0, %c0_i32_1 : i32, i32, i32, i32, i32
  }
}

</mosaic_0001>

<bundles_post_ra>
// kernel: deconv2d_batchnorm_relu.1
= control target key start
LH: loop header
LB: loop body
LE: loop exit
PB: predicated region body
PF: predicated region fallthrough
CT: control target
= control target key end

     0   :  { %s1626_s12 = smov 0   ;;  %s1628_s13 = smov 0   ;;  %s1858_s0 = inlined_call_operand.vmem [shape: bf16[2,1,4,408], index: 0, kind: input, shape index: {}]   ;;  %s1859_s1 = inlined_call_operand.vmem [shape: bf16[3,3,8,4], index: 1, kind: input, shape index: {}]   ;;  %s1860_s2 = inlined_call_operand.vmem [shape: f32[8,1], index: 2, kind: input, shape index: {}]   ;;  %s1861_s3 = inlined_call_operand.vmem [shape: f32[2,1,4,8,384], index: 3, kind: output, shape index: {}]  }
   0x1   :  { %s1630_s14 = smov 0  }
   0x2 LB: > { %s25_s15 = sadd.s32 1, %s1593_s13  ;;  %p1414_p0 = scmp.ge.s32.totalorder %s1597_s14, 1  ;;  %s1597_s14 = sphi %s1630_s14, %s13_s14   ;;  %s1593_s13 = sphi %s1628_s13, %s1863_s13   ;;  %s1589_s12 = sphi %s1626_s12, %s1862_s12  }
   0x3   : > { %p27_p1 = scmp.ge.s32.totalorder %s25_s15, 2  ;;  %p157_p2 = scmp.lt.s32.totalorder %s1597_s14, 3 }
   0x5   : > { %s1865_s15 = smov (%p27_p1, %s25_s15), 0  ;;  %p158_p3 = pnand %p1414_p0, %p157_p2 }
   0x6   : > { %p189_p4 = scmp.lt.s32.totalorder (!%p158_p3), %s1589_s12, 1  ;;  %s1603_s20 = smov (!%p158_p3), 127  }
   0x7   : > { %161 = sbr.rel (%p158_p3) target bundleno = 395 (0x18b), region = 32  ;;  %s1604_s23 = smov (!%p158_p3), 111  }
   0x8   : > { %s1605_s26 = smov (!%p158_p3), 110  }
   0xc   : > { %v222_v0 = vlaneseq  ;;  %v1599_v1 = vmov 1983009808   ;;  %v1600_v3 = vmov 0.0   ;;  %s1867_s12 = smov (!%p189_p4, %s1589_s12), 1  ;;  %v1601_v5 = vmov 0   ;;  %v208_v38 = vld [vmem:[%s1860_s2] sm:$0xff] }
   0xd   : > { %v220_v2 = vunpack.c.l.s4 %v1599_v1  ;;  %1483 = vmatprep.subr.bf16.mxu1 %v1600_v3  ;;  %280 = vmatprep.mubr.bf16.mxu0 %v1601_v5  ;;  %vm1602_vm0 = vmmov 0   ;;  %s1464_s16 = sshll.u32 %s1867_s12, 3  ;;  %vm238_vm1 = vcmask 1041408   ;;  %v1418_v29 = vld [vmem:[%s1859_s1 + $0x10] sm:$0xf]  ;;  %vm234_vm2 = vcmask 31744  }
   0xe   : > { %v223_v4 = vshrl.u32 %v222_v0, 7  ;;  %1569 = vset.pattern.permute.xlu0 %v1601_v5  ;;  %1485 = vmatprep.mubr.msk.bf16.mxu1 %vm1602_vm0, %v1600_v3  ;;  %s1655_s19 = scalar_lea.vmem %s1858_s0, %s1464_s16  ;;  %v1423_v33 = vld [vmem:[%s1859_s1 + $0x14] sm:$0xf]  ;;  %vm477_vm3 = vcmask 1039360   ;;  %v1422_v48 = vld [vmem:[%s1859_s1 + $0xc] sm:$0xf] }
   0xf   : > { %v221_v6 = vunpack.c.0.s8 %v220_v2  ;;  %v337_v8 = vld [vmem:[%s1655_s19] sm:$0xff]  ;;  %vm726_vm4 = vcmask 908288   ;;  %v1434_v58 = vld [vmem:[%s1859_s1 + $0x1c] sm:$0xf]  ;;  %vm967_vm5 = vcmask 900096  }
  0x10   : > { %v211_v9 = vld [vmem:[%s1655_s19] sm:$0x3f]  ;;  %v452_v12 = vcombine.high %v337_v8, %v337_v8 }
  0x11   : > { %v1657_v7 = vsub.s32 %v221_v6, %v223_v4  ;;  %v340_v10 = vld [vmem:[%s1655_s19] sm:$0x3f]  ;;  %v218_v14 = vcombine.high %v211_v9, %v211_v9 }
  0x12   : > { %v589_v15 = vld [vmem:[%s1655_s19] sm:$0x3f]  ;;  %v342_v17 = vcombine.high %v340_v10, %v340_v10 }
  0x13   : > { %v459_v11 = vrot.slane %v337_v8, %v1657_v7  ;;  %v225_v13 = vrot.slane %v211_v9, %v1657_v7  ;;  %v349_v16 = vrot.slane %v340_v10, %v1657_v7  ;;  %v1667_v18 = vrot.slane %v589_v15, %v1657_v7  ;;  %v1194_v34 = vld [vmem:[%s1655_s19] sm:$0x3f] }
  0x14   : > { %v466_v20 = vrot.slane %v452_v12, %v1657_v7  ;;  %v232_v23 = vrot.slane %v218_v14, %v1657_v7  ;;  %v356_v26 = vrot.slane %v342_v17, %v1657_v7  ;;  %v591_v27 = vcombine.high %v589_v15, %v589_v15  ;;  %v1433_v6 = vld [vmem:[%s1859_s1 + $0x4] sm:$0xf] }
  0x15   : > { %469 = vrot.lane.b32.xlu0 %v459_v11, %s1603_s20  ;;  %v467_v19 = vcombine.high %v459_v11, %v459_v11  ;;  %v233_v21 = vcombine.high %v225_v13, %v225_v13  ;;  %v240_v22 = vsel %vm238_vm1, %v225_v13, 0  ;;  %v357_v24 = vcombine.high %v349_v16, %v349_v16 }
  0x16   : > { %473 = vrot.lane.b32.xlu1 %v466_v20, %s1603_s20  ;;  %v468_v25 = vcombine.high %v466_v20, %v466_v20  ;;  %v246_v28 = vsel %vm238_vm1, %v232_v23, 0  ;;  %v362_v30 = vsel %vm238_vm1, %v349_v16, 0  ;;  %v1683_v31 = vrot.slane %v591_v27, %v1657_v7  ;;  %v1444_v16 = vld [vmem:[%s1859_s1 + $0x8] sm:$0xf] }
  0x17   : > { %1419 = vmatprep.subr.msk.bf16.mxu0 %vm238_vm1, %v233_v21  ;;  %1484 = vmatpush3.bf16.msra.mxu1 %v246_v28  ;;  %v368_v32 = vsel %vm238_vm1, %v356_v26, 0  ;;  %v1708_v35 = vrot.slane %v1194_v34, %v1657_v7  ;;  %v1196_v36 = vcombine.high %v1194_v34, %v1194_v34  ;;  %v606_v42 = vcombine.high %v1667_v18, %v1667_v18  ;;  %v833_v26 = vld [vmem:[%s1859_s1] sm:$0xf] }
  0x18   : > { %263 = vmatpush1.bf16.msra.mxu0 %v240_v22  ;;  %1489 = vmatprep.subr.bf16.mxu1 %v1600_v3  ;;  %v611_v51 = vsel %vm238_vm1, %v1667_v18, 0  ;;  %v617_v53 = vsel %vm238_vm1, %v1683_v31, 0  ;;  %v1451_v31 = vld [vmem:[%s1859_s1 + $0x18] sm:$0xf]  ;;  %v1455_v34 = vld [vmem:[%s1859_s1 + $0x20] sm:$0xf] }
  0x19   : > { %471 = vrot.lane.b32.xlu0 %v467_v19, %s1603_s20  ;;  %1424 = vmatprep.subr.msk.bf16.mxu0 %vm238_vm1, %v357_v24  ;;  %v1712_v37 = vrot.slane %v1196_v36, %v1657_v7 }
  0x1a   : > { %475 = vrot.lane.b32.xlu1 %v468_v25, %s1603_s20  ;;  %1486 = vmatmul.mubr.msk.bf16.vlgmr.msra.gmra.mxu1 %vm234_vm2, %v1418_v29 }
  0x1b   : > { %1420 = vmatmul.mubr.msk.bf16.vlgmr.msra.gmra.mxu0 %vm234_vm2, %v1418_v29  ;;  %1490 = vmatpush3.bf16.msra.mxu1 %v368_v32  ;;  %v1211_v29 = vcombine.high %v1708_v35, %v1708_v35  ;;  %v1216_v32 = vsel %vm238_vm1, %v1708_v35, 0 }
  0x1c   : > { %385 = vmatpush1.bf16.msra.mxu0 %v362_v30  ;;  %402 = vmatprep.mubr.bf16.mxu0 %v1601_v5 }
  0x1d   : > { %718 = vrot.lane.b32.xlu0 %v459_v11, %s1604_s23  ;;  %1491 = vmatprep.mubr.msk.bf16.mxu1 %vm1602_vm0, %v1600_v3 }
  0x1e   : > { %720 = vrot.lane.b32.xlu1 %v467_v19, %s1604_s23  ;;  %1495 = vmatprep.subr.bf16.mxu1 %v1600_v3 }
  0x21   : > { %722 = vrot.lane.b32.xlu0 %v466_v20, %s1604_s23 }
  0x22   : > { %724 = vrot.lane.b32.xlu1 %v468_v25, %s1604_s23  ;;  %1492 = vmatmul.mubr.msk.bf16.vlgmr.msra.gmra.mxu1 %vm234_vm2, %v1423_v33 }
  0x23   : > { %1425 = vmatmul.mubr.msk.bf16.vlgmr.msra.gmra.mxu0 %vm234_vm2, %v1423_v33  ;;  %1497 = vmatprep.mubr.msk.bf16.mxu1 %vm1602_vm0, %v1600_v3  ;;  %v1222_v33 = vsel %vm238_vm1, %v1712_v37, 0 }
  0x24   : > { %525 = vmatprep.mubr.bf16.mxu0 %v1601_v5 }
  0x25   : > { %855 = vrot.lane.b32.xlu0 %v459_v11, %s1604_s23 }
  0x26   : > { %857 = vrot.lane.b32.xlu1 %v467_v19, %s1604_s23 }
  0x29   : > { %859 = vrot.lane.b32.xlu0 %v466_v20, %s1604_s23 }
  0x2a   : > { %861 = vrot.lane.b32.xlu1 %v468_v25, %s1604_s23 }
  0x2d   : > { %959 = vrot.lane.b32.xlu0 %v459_v11, %s1605_s26 }
  0x2e   : > { %961 = vrot.lane.b32.xlu1 %v467_v19, %s1605_s26 }
  0x31   : > { %963 = vrot.lane.b32.xlu0 %v466_v20, %s1605_s26 }
  0x32   : > { %965 = vrot.lane.b32.xlu1 %v468_v25, %s1605_s26 }
  0x35   : > { %1085 = vrot.lane.b32.xlu0 %v459_v11, %s1603_s20 }
  0x36   : > { %1087 = vrot.lane.b32.xlu1 %v467_v19, %s1603_s20 }
  0x39   : > { %1089 = vrot.lane.b32.xlu0 %v466_v20, %s1603_s20 }
  0x3a   : > { %1091 = vrot.lane.b32.xlu1 %v468_v25, %s1603_s20  ;;  %s1537_s20 = smul.u32 96, %s1867_s12 }
  0x3c   : > { %s1824_s23 = scalar_lea.vmem %s1861_s3, %s1537_s20 }
  0x3d   : > { %214 = vperm.xlu0 %1569, %v208_v38  }
  0x87   : > { %v470_v39 = vpop.permute.xlu0 %469 }
  0x88   : > { %v474_v40 = vpop.permute.xlu1 %473 }
  0x8b   : > { %v472_v41 = vpop.permute.xlu0 %471 }
  0x8c   : > { %v478_v43 = vsel %vm477_vm3, %v470_v39, %v472_v41  ;;  %v479_v44 = vsel %vm477_vm3, %v472_v41, %v474_v40  ;;  %v476_v46 = vpop.permute.xlu1 %475 }
  0x8d   : > { %v485_v45 = vsel %vm238_vm1, %v478_v43, 0  ;;  %1427 = vmatprep.subr.msk.bf16.mxu0 %vm238_vm1, %v479_v44  ;;  %v480_v47 = vsel %vm477_vm3, %v474_v40, %v476_v46 }
  0x8e   : > { %508 = vmatpush1.bf16.msra.mxu0 %v485_v45  ;;  %v491_v49 = vsel %vm238_vm1, %v480_v47, 0 }
  0x8f   : > { %v719_v50 = vpop.permute.xlu0 %718  ;;  %1435 = vmatprep.subr.msk.bf16.mxu0 %vm238_vm1, %v606_v42  ;;  %1496 = vmatpush3.bf16.msra.mxu1 %v491_v49 }
  0x90   : > { %v721_v52 = vpop.permute.xlu1 %720  ;;  %1501 = vmatprep.subr.bf16.mxu1 %v1600_v3 }
  0x91   : > { %1428 = vmatmul.mubr.msk.bf16.vlgmr.msra.gmra.mxu0 %vm234_vm2, %v1422_v48  ;;  %v727_v55 = vsel %vm726_vm4, %v719_v50, %v721_v52 }
  0x92   : > { %634 = vmatpush1.bf16.msra.mxu0 %v611_v51  ;;  %651 = vmatprep.mubr.bf16.mxu0 %v1601_v5  ;;  %v734_v60 = vsel %vm238_vm1, %v727_v55, 0 }
  0x93   : > { %1498 = vmatmul.mubr.msk.bf16.vlgmr.msra.gmra.mxu1 %vm234_vm2, %v1422_v48  ;;  %v723_v54 = vpop.permute.xlu0 %722 }
  0x94   : > { %v728_v56 = vsel %vm726_vm4, %v721_v52, %v723_v54  ;;  %1502 = vmatpush3.bf16.msra.mxu1 %v617_v53  ;;  %1503 = vmatprep.mubr.msk.bf16.mxu1 %vm1602_vm0, %v1600_v3  ;;  %v725_v57 = vpop.permute.xlu1 %724 }
  0x95   : > { %1438 = vmatprep.subr.msk.bf16.mxu0 %vm238_vm1, %v728_v56  ;;  %1507 = vmatprep.subr.bf16.mxu1 %v1600_v3  ;;  %v729_v59 = vsel %vm726_vm4, %v723_v54, %v725_v57 }
  0x96   : > { %v740_v62 = vsel %vm238_vm1, %v729_v59, 0 }
  0x97   : > { %v856_v61 = vpop.permute.xlu0 %855 }
  0x98   : > { %v858_v63 = vpop.permute.xlu1 %857 }
  0x99   : > { %1436 = vmatmul.mubr.msk.bf16.vlgmr.msra.gmra.mxu0 %vm234_vm2, %v1434_v58  ;;  %v863_v1 = vsel %vm726_vm4, %v856_v61, %v858_v63 }
  0x9a   : > { %757 = vmatpush1.bf16.msra.mxu0 %v734_v60  ;;  %774 = vmatprep.mubr.bf16.mxu0 %v1601_v5  ;;  %v870_v8 = vsel %vm238_vm1, %v863_v1, 0 }
  0x9b   : > { %1504 = vmatmul.mubr.msk.bf16.vlgmr.msra.gmra.mxu1 %vm234_vm2, %v1434_v58  ;;  %v860_v0 = vpop.permute.xlu0 %859 }
  0x9c   : > { %1508 = vmatpush3.bf16.msra.mxu1 %v740_v62  ;;  %v864_v2 = vsel %vm726_vm4, %v858_v63, %v860_v0  ;;  %1509 = vmatprep.mubr.msk.bf16.mxu1 %vm1602_vm0, %v1600_v3  ;;  %v862_v4 = vpop.permute.xlu1 %861 }
  0x9d   : > { %1445 = vmatprep.subr.msk.bf16.mxu0 %vm238_vm1, %v864_v2  ;;  %1513 = vmatprep.subr.bf16.mxu1 %v1600_v3  ;;  %v865_v7 = vsel %vm726_vm4, %v860_v0, %v862_v4 }
  0x9e   : > { %v876_v10 = vsel %vm238_vm1, %v865_v7, 0 }
  0x9f   : > { %v960_v9 = vpop.permute.xlu0 %959 }
  0xa0   : > { %v962_v11 = vpop.permute.xlu1 %961 }
  0xa1   : > { %1439 = vmatmul.mubr.msk.bf16.vlgmr.msra.gmra.mxu0 %vm234_vm2, %v1433_v6  ;;  %v968_v13 = vsel %vm967_vm5, %v960_v9, %v962_v11 }
  0xa2   : > { %893 = vmatpush1.bf16.msra.mxu0 %v870_v8  ;;  %910 = vmatprep.mubr.bf16.mxu0 %v1601_v5  ;;  %v975_v18 = vsel %vm238_vm1, %v968_v13, 0 }
  0xa3   : > { %1510 = vmatmul.mubr.msk.bf16.vlgmr.msra.gmra.mxu1 %vm234_vm2, %v1433_v6  ;;  %v964_v12 = vpop.permute.xlu0 %963 }
  0xa4   : > { %1514 = vmatpush3.bf16.msra.mxu1 %v876_v10  ;;  %v969_v14 = vsel %vm967_vm5, %v962_v11, %v964_v12  ;;  %1515 = vmatprep.mubr.msk.bf16.mxu1 %vm1602_vm0, %v1600_v3  ;;  %v966_v15 = vpop.permute.xlu1 %965 }
  0xa5   : > { %1448 = vmatprep.subr.msk.bf16.mxu0 %vm238_vm1, %v969_v14  ;;  %1519 = vmatprep.subr.bf16.mxu1 %v1600_v3  ;;  %v970_v17 = vsel %vm967_vm5, %v964_v12, %v966_v15 }
  0xa6   : > { %v981_v20 = vsel %vm238_vm1, %v970_v17, 0 }
  0xa7   : > { %v1086_v19 = vpop.permute.xlu0 %1085 }
  0xa8   : > { %v1088_v21 = vpop.permute.xlu1 %1087 }
  0xa9   : > { %1446 = vmatmul.mubr.msk.bf16.vlgmr.msra.gmra.mxu0 %vm234_vm2, %v1444_v16  ;;  %v1093_v23 = vsel %vm477_vm3, %v1086_v19, %v1088_v21 }
  0xaa   : > { %998 = vmatpush1.bf16.msra.mxu0 %v975_v18  ;;  %1015 = vmatprep.mubr.bf16.mxu0 %v1601_v5  ;;  %v1100_v28 = vsel %vm238_vm1, %v1093_v23, 0 }
  0xab   : > { %1516 = vmatmul.mubr.msk.bf16.vlgmr.msra.gmra.mxu1 %vm234_vm2, %v1444_v16  ;;  %v1090_v22 = vpop.permute.xlu0 %1089 }
  0xac   : > { %1520 = vmatpush3.bf16.msra.mxu1 %v981_v20  ;;  %v1094_v24 = vsel %vm477_vm3, %v1088_v21, %v1090_v22  ;;  %1521 = vmatprep.mubr.msk.bf16.mxu1 %vm1602_vm0, %v1600_v3  ;;  %v1092_v25 = vpop.permute.xlu1 %1091 }
  0xad   : > { %1452 = vmatprep.subr.msk.bf16.mxu0 %vm238_vm1, %v1094_v24  ;;  %1525 = vmatprep.subr.bf16.mxu1 %v1600_v3  ;;  %v1095_v27 = vsel %vm477_vm3, %v1090_v22, %v1092_v25 }
  0xae   : > { %v1106_v30 = vsel %vm238_vm1, %v1095_v27, 0 }
  0xb1   : > { %1449 = vmatmul.mubr.msk.bf16.vlgmr.msra.gmra.mxu0 %vm234_vm2, %v833_v26 }
  0xb2   : > { %1123 = vmatpush1.bf16.msra.mxu0 %v1100_v28  ;;  %1140 = vmatprep.mubr.bf16.mxu0 %v1601_v5 }
  0xb3   : > { %1522 = vmatmul.mubr.msk.bf16.vlgmr.msra.gmra.mxu1 %vm234_vm2, %v833_v26  ;;  %1456 = vmatprep.subr.msk.bf16.mxu0 %vm238_vm1, %v1211_v29 }
  0xb4   : > { %1526 = vmatpush3.bf16.msra.mxu1 %v1106_v30  ;;  %1527 = vmatprep.mubr.msk.bf16.mxu1 %vm1602_vm0, %v1600_v3 }
  0xb5   : > { %1531 = vmatprep.subr.bf16.mxu1 %v1600_v3 }
  0xb8   : > { %v1818_v35 = vpop.permute.xlu0 %214 }
  0xb9   : > { %1453 = vmatmul.mubr.msk.bf16.vlgmr.msra.gmra.mxu0 %vm234_vm2, %v1451_v31 }
  0xba   : > { %1239 = vmatpush1.bf16.msra.mxu0 %v1216_v32  ;;  %1256 = vmatprep.mubr.bf16.mxu0 %v1601_v5 }
  0xbb   : > { %1528 = vmatmul.mubr.msk.bf16.vlgmr.msra.gmra.mxu1 %vm234_vm2, %v1451_v31 }
  0xbc   : > { %1532 = vmatpush3.bf16.msra.mxu1 %v1222_v33  ;;  %1533 = vmatprep.mubr.msk.bf16.mxu1 %vm1602_vm0, %v1600_v3 }
  0xc1   : > { %1457 = vmatmul.mubr.msk.bf16.vlgmr.msra.gmra.mxu0 %vm234_vm2, %v1455_v34 }
  0xc3   : > { %1534 = vmatmul.mubr.msk.bf16.vlgmr.msra.gmra.mxu1 %vm234_vm2, %v1455_v34 }
  0xda   : > { %v323_v37 = vpop.f32.mrf.mxu1 }
  0xdb   : > { %v282_v36 = vpop.f32.mrf.mxu0  ;;  %v324_v38 = vadd.f32 %v323_v37, %v1818_v35 }
  0xdc   : > { %v283_v5 = vadd.f32 %v282_v36, %v1818_v35  ;;  %v1487_v39 = vpop.f32.mrf.mxu1 }
  0xdd   : > { %v284_v3 = vpop.f32.mrf.mxu0  ;;  %v331_v43 = vmax.f32 %v324_v38, 0.0 }
  0xde   : > { %v285_v40 = vadd.f32 %v284_v3, %v1818_v35  ;;  %v329_v41 = vmax.f32 %v283_v5, 0.0  ;;  %v326_v45 = vpop.f32.mrf.mxu1 }
  0xdf   : > { %v286_v42 = vpop.f32.mrf.mxu0  ;;  %334 = vst [vmem:[%s1824_s23 + $0x10] sm:$0xff] %v331_v43 }
  0xe0   : > { %v330_v44 = vmax.f32 %v285_v40, 0.0  ;;  %332 = vst [vmem:[%s1824_s23] sm:$0xff] %v329_v41  ;;  %v1488_v47 = vpop.f32.mrf.mxu1 }
  0xe1   : > { %v287_v46 = vpop.f32.mrf.mxu0 }
  0xe2   : > { %333 = vst [vmem:[%s1824_s23 + $0x8] sm:$0xff] %v330_v44  ;;  %v445_v49 = vpop.f32.mrf.mxu1 }
  0xe3   : > { %v404_v48 = vpop.f32.mrf.mxu0 }
  0xe4   : > { %v1493_v51 = vpop.f32.mrf.mxu1 }
  0xe5   : > { %v406_v50 = vpop.f32.mrf.mxu0 }
  0xe6   : > { %v448_v53 = vpop.f32.mrf.mxu1 }
  0xe7   : > { %v408_v52 = vpop.f32.mrf.mxu0 }
  0xe8   : > { %v1494_v55 = vpop.f32.mrf.mxu1 }
  0xe9   : > { %v409_v54 = vpop.f32.mrf.mxu0 }
 0x151   : > { %v527_v56 = vpop.f32.mrf.mxu0 }
 0x152   : > { %v528_v57 = vadd.f32 %v527_v56, %v404_v48 }
 0x153   : > { %v529_v58 = vpop.f32.mrf.mxu0  ;;  %v568_v59 = vpop.f32.mrf.mxu1 }
 0x154   : > { %v574_v60 = vadd.f32 %v528_v57, %v1818_v35  ;;  %v530_v61 = vadd.f32 %v529_v58, %v406_v50  ;;  %v569_v62 = vadd.f32 %v568_v59, %v445_v49 }
 0x155   : > { %v531_v63 = vpop.f32.mrf.mxu0  ;;  %v1499_v0 = vpop.f32.mrf.mxu1 }
 0x156   : > { %v577_v1 = vmax.f32 %v574_v60, 0.0  ;;  %v575_v2 = vadd.f32 %v530_v61, %v1818_v35  ;;  %v576_v4 = vadd.f32 %v569_v62, %v1818_v35 }
 0x157   : > { %v532_v6 = vpop.f32.mrf.mxu0  ;;  %v571_v7 = vpop.f32.mrf.mxu1 }
 0x158   : > { %1430 = vst [vmem:[%s1824_s23 + $0x18] sm:$0xff] %v577_v1  ;;  %v578_v8 = vmax.f32 %v575_v2, 0.0  ;;  %v579_v9 = vmax.f32 %v576_v4, 0.0 }
 0x159   : > { %v1500_v10 = vpop.f32.mrf.mxu1  ;;  %v653_v11 = vpop.f32.mrf.mxu0 }
 0x15a   : > { %1431 = vst [vmem:[%s1824_s23 + $0x20] sm:$0xff] %v578_v8  ;;  %1432 = vst [vmem:[%s1824_s23 + $0x28] sm:$0xff] %v579_v9 }
 0x15b   : > { %v655_v12 = vpop.f32.mrf.mxu0  ;;  %v694_v13 = vpop.f32.mrf.mxu1 }
 0x15d   : > { %v657_v14 = vpop.f32.mrf.mxu0  ;;  %v1505_v15 = vpop.f32.mrf.mxu1 }
 0x15f   : > { %v658_v16 = vpop.f32.mrf.mxu0  ;;  %v697_v17 = vpop.f32.mrf.mxu1 }
 0x161   : > { %v1506_v18 = vpop.f32.mrf.mxu1  ;;  %v776_v19 = vpop.f32.mrf.mxu0 }
 0x162   : > { %v777_v20 = vadd.f32 %v776_v19, %v653_v11 }
 0x163   : > { %v778_v21 = vpop.f32.mrf.mxu0  ;;  %v817_v22 = vpop.f32.mrf.mxu1 }
 0x164   : > { %v823_v23 = vadd.f32 %v777_v20, %v1818_v35  ;;  %v779_v24 = vadd.f32 %v778_v21, %v655_v12  ;;  %v818_v25 = vadd.f32 %v817_v22, %v694_v13 }
 0x165   : > { %v780_v26 = vpop.f32.mrf.mxu0  ;;  %v1511_v27 = vpop.f32.mrf.mxu1 }
 0x166   : > { %v826_v28 = vmax.f32 %v823_v23, 0.0  ;;  %v824_v29 = vadd.f32 %v779_v24, %v1818_v35  ;;  %v825_v30 = vadd.f32 %v818_v25, %v1818_v35 }
 0x167   : > { %v781_v31 = vpop.f32.mrf.mxu0  ;;  %v820_v32 = vpop.f32.mrf.mxu1 }
 0x168   : > { %1441 = vst [vmem:[%s1824_s23 + $0x30] sm:$0xff] %v826_v28  ;;  %v827_v33 = vmax.f32 %v824_v29, 0.0  ;;  %v828_v34 = vmax.f32 %v825_v30, 0.0 }
 0x169   : > { %v1512_v36 = vpop.f32.mrf.mxu1  ;;  %v912_v37 = vpop.f32.mrf.mxu0 }
 0x16a   : > { %1442 = vst [vmem:[%s1824_s23 + $0x38] sm:$0xff] %v827_v33  ;;  %1443 = vst [vmem:[%s1824_s23 + $0x40] sm:$0xff] %v828_v34 }
 0x16b   : > { %v914_v5 = vpop.f32.mrf.mxu0  ;;  %v953_v3 = vpop.f32.mrf.mxu1 }
 0x16d   : > { %v916_v38 = vpop.f32.mrf.mxu0  ;;  %v1517_v39 = vpop.f32.mrf.mxu1 }
 0x16f   : > { %v917_v40 = vpop.f32.mrf.mxu0  ;;  %v956_v41 = vpop.f32.mrf.mxu1 }
 0x171   : > { %v1518_v42 = vpop.f32.mrf.mxu1  ;;  %v1017_v43 = vpop.f32.mrf.mxu0 }
 0x172   : > { %v1018_v56 = vadd.f32 %v1017_v43, %v912_v37 }
 0x173   : > { %v1019_v44 = vpop.f32.mrf.mxu0  ;;  %v1058_v45 = vpop.f32.mrf.mxu1 }
 0x174   : > { %v1020_v59 = vadd.f32 %v1019_v44, %v914_v5  ;;  %v1059_v60 = vadd.f32 %v1058_v45, %v953_v3 }
 0x175   : > { %v1021_v46 = vpop.f32.mrf.mxu0  ;;  %v1523_v47 = vpop.f32.mrf.mxu1 }
 0x177   : > { %v1022_v48 = vpop.f32.mrf.mxu0  ;;  %v1061_v49 = vpop.f32.mrf.mxu1 }
 0x179   : > { %v1524_v50 = vpop.f32.mrf.mxu1  ;;  %v1142_v51 = vpop.f32.mrf.mxu0 }
 0x17a   : > { %v1189_v61 = vadd.f32 %v1142_v51, %v1018_v56 }
 0x17b   : > { %v1144_v52 = vpop.f32.mrf.mxu0  ;;  %v1183_v53 = vpop.f32.mrf.mxu1 }
 0x17c   : > { %v1190_v0 = vadd.f32 %v1144_v52, %v1020_v59  ;;  %v1191_v1 = vadd.f32 %v1183_v53, %v1059_v60 }
 0x17d   : > { %v1146_v54 = vpop.f32.mrf.mxu0  ;;  %v1529_v55 = vpop.f32.mrf.mxu1 }
 0x17f   : > { %v1147_v57 = vpop.f32.mrf.mxu0  ;;  %v1186_v58 = vpop.f32.mrf.mxu1 }
 0x181   : > { %v1530_v62 = vpop.f32.mrf.mxu1  ;;  %v1258_v63 = vpop.f32.mrf.mxu0 }
 0x182   : > { %v1305_v2 = vadd.f32 %v1258_v63, %v1189_v61 }
 0x183   : > { %v1260_v4 = vpop.f32.mrf.mxu0  ;;  %v1299_v6 = vpop.f32.mrf.mxu1 }
 0x184   : > { %v1308_v7 = vadd.f32 %v1305_v2, %v1818_v35  ;;  %v1306_v8 = vadd.f32 %v1260_v4, %v1190_v0  ;;  %v1307_v9 = vadd.f32 %v1299_v6, %v1191_v1 }
 0x185   : > { %v1262_v10 = vpop.f32.mrf.mxu0  ;;  %v1535_v11 = vpop.f32.mrf.mxu1 }
 0x186   : > { %v1311_v12 = vmax.f32 %v1308_v7, 0.0  ;;  %v1309_v13 = vadd.f32 %v1306_v8, %v1818_v35  ;;  %v1310_v14 = vadd.f32 %v1307_v9, %v1818_v35 }
 0x187   : > { %v1263_v15 = vpop.f32.mrf.mxu0  ;;  %v1302_v16 = vpop.f32.mrf.mxu1 }
 0x188   : > { %1459 = vst [vmem:[%s1824_s23 + $0x48] sm:$0xff] %v1311_v12  ;;  %v1312_v17 = vmax.f32 %v1309_v13, 0.0  ;;  %v1313_v18 = vmax.f32 %v1310_v14, 0.0 }
 0x189   : > { %v1536_v19 = vpop.f32.mrf.mxu1 }
 0x18a   : > { %1460 = vst [vmem:[%s1824_s23 + $0x50] sm:$0xff] %v1312_v17  ;;  %1461 = vst [vmem:[%s1824_s23 + $0x58] sm:$0xff] %v1313_v18 }
 0x18b PF: > { %s13_s14 = sadd.s32 1, %s1597_s14   ;;  %s1862_s12 = smov %s1593_s13 }
 0x18c   : > { %p10_p5 = scmp.ge.s32.totalorder %s13_s14, 4   ;;  %s1863_s13 = smov %s1865_s15 }
 0x18e   :  { %12 = sbr.rel (!%p10_p5) target bundleno = 2 (0x2), region = 73 }

</bundles_post_ra>
